<compile_context>
chip_gen: v7x
topology: tpu7x:2x2x1
jax: 0.10.0
libtpu: 0.0.40
codegen_flags: <defaults>
</compile_context>

<pallas_src>
import functools

import jax
import jax.numpy as jnp
from jax import lax
from jax.experimental import pallas as pl
from jax.experimental.pallas import tpu as pltpu


def _round_up(v: int, m: int) -> int:
    return ((v + m - 1) // m) * m


def _linear_kernel(x_ref, w_ref, b_ref, o_ref, acc_ref):
    """One (tm, tn) output tile; K axis is the reduction grid axis."""
    k = pl.program_id(2)

    @pl.when(k == 0)
    def _():
        acc_ref[...] = jnp.zeros_like(acc_ref)

    # x tile: (tm, tk), w tile: (tn, tk) in PyTorch layout -> contract last dims
    # of both operands on the MXU; no transposed weight copy is materialized.
    acc_ref[...] += lax.dot_general(
        x_ref[...], w_ref[...],
        dimension_numbers=(((1,), (1,)), ((), ())),
        preferred_element_type=jnp.float32,
    )

    @pl.when(k == pl.num_programs(2) - 1)
    def _():
        o_ref[...] = (acc_ref[...] + b_ref[...]).astype(o_ref.dtype)


@functools.partial(jax.jit, static_argnames=("tm", "tn", "tk", "mxu_dtype"))
def linear_forward(x, weight, bias, *, tm=256, tn=256, tk=512,
                   mxu_dtype=jnp.bfloat16):
    """Pallas equivalent of torch.nn.Linear forward.

    x:      (batch, input_size)
    weight: (output_size, input_size)  -- PyTorch layout (kept as-is)
    bias:   (output_size,)
    returns (batch, output_size), same dtype as x.
    """
    batch, input_size = x.shape
    output_size, _ = weight.shape

    # Clamp tiles to the (padded) problem while honoring TPU tiling rules:
    # lane dims (tk of x/W, tn of out/bias) multiples of 128, sublane dims multiples of 8.
    tm = min(tm, _round_up(batch, 8))
    tn = min(tn, _round_up(output_size, 128))
    tk = min(tk, _round_up(input_size, 128))

    Mp = _round_up(batch, tm)
    Np = _round_up(output_size, tn)
    Kp = _round_up(input_size, tk)

    x_p = x
    if (Mp, Kp) != x.shape:
        x_p = jnp.pad(x, ((0, Mp - batch), (0, Kp - input_size)))
    w_p = weight
    if (Np, Kp) != weight.shape:
        w_p = jnp.pad(weight, ((0, Np - output_size), (0, Kp - input_size)))
    b_p = bias.reshape(1, output_size)
    if Np != output_size:
        b_p = jnp.pad(b_p, ((0, 0), (0, Np - output_size)))

    # Feed the MXU in bf16 (f32 accumulation preserved in-kernel); bias stays f32.
    if mxu_dtype is not None:
        x_p = x_p.astype(mxu_dtype)
        w_p = w_p.astype(mxu_dtype)
    b_p = b_p.astype(jnp.float32)

    grid = (Mp // tm, Np // tn, Kp // tk)

    out_p = pl.pallas_call(
        _linear_kernel,
        out_shape=jax.ShapeDtypeStruct((Mp, Np), jnp.float32),
        grid=grid,
        in_specs=[
            pl.BlockSpec((tm, tk), lambda i, j, k: (i, k)),   # x
            pl.BlockSpec((tn, tk), lambda i, j, k: (j, k)),   # W (PyTorch layout)
            pl.BlockSpec((1, tn), lambda i, j, k: (0, j)),    # bias row
        ],
        out_specs=pl.BlockSpec((tm, tn), lambda i, j, k: (i, j)),
        scratch_shapes=[pltpu.VMEM((tm, tn), jnp.float32)],   # f32 accumulator
        compiler_params=pltpu.CompilerParams(
            dimension_semantics=("parallel", "parallel", "arbitrary"),
        ),
    )(x_p, w_p, b_p)

    out = out_p[:batch, :output_size]
    return out.astype(x.dtype)


if __name__ == "__main__":
    # Small shapes consistent with the module: LinearRegressionTorch(32, 8), batch=16.
    batch, input_size, output_size = 16, 32, 8

    key = jax.random.PRNGKey(0)
    kx, kw, kb = jax.random.split(key, 3)

    # Deterministic params mimicking nn.Linear's U(-1/sqrt(in), 1/sqrt(in)) init.
    bound = 1.0 / jnp.sqrt(jnp.float32(input_size))
    weight = jax.random.uniform(kw, (output_size, input_size),
                                dtype=jnp.float32, minval=-bound, maxval=bound)
    bias = jax.random.uniform(kb, (output_size,),
                              dtype=jnp.float32, minval=-bound, maxval=bound)
    x = jax.random.normal(kx, (batch, input_size), dtype=jnp.float32)

    out = jax.block_until_ready(linear_forward(x, weight, bias))
    assert out.shape == (batch, output_size)

    # Tight check vs. a reference using the same bf16-rounded MXU operands + f32 accum.
    ref_bf16 = (x.astype(jnp.bfloat16).astype(jnp.float32)
                @ weight.astype(jnp.bfloat16).astype(jnp.float32).T) + bias
    assert jnp.allclose(out, ref_bf16, atol=1e-4, rtol=1e-4)

    # Loose check vs. the pure-f32 PyTorch-equivalent reference (bf16 input rounding).
    ref_f32 = x @ weight.T + bias
    assert jnp.allclose(out, ref_f32, atol=2e-2, rtol=2e-2)

    print("KERNEL_OK")
</pallas_src>

<mosaic_0001>
module attributes {stable_mosaic.version = 11 : i64} {
  func.func @_linear_kernel(%arg0: i32, %arg1: i32, %arg2: i32, %arg3: memref<16x128xbf16, #tpu.memory_space<vmem>>, %arg4: memref<128x128xbf16, #tpu.memory_space<vmem>>, %arg5: memref<1x128xf32, #tpu.memory_space<vmem>>, %arg6: memref<16x128xf32, #tpu.memory_space<vmem>>, %arg7: memref<16x128xf32, #tpu.memory_space<vmem>>) attributes {dimension_semantics = [#tpu.dimension_semantics<parallel>, #tpu.dimension_semantics<parallel>, #tpu.dimension_semantics<arbitrary>], iteration_bounds = array<i64: 1, 1, 1>, scalar_prefetch = 0 : i64, scratch_operands = 1 : i64, tpu.core_type = #tpu.core_type<tc>, window_params = [{transform_indices = @transform_0, window_bounds = array<i64: 16, 128>}, {transform_indices = @transform_1, window_bounds = array<i64: 128, 128>}, {transform_indices = @transform_2, window_bounds = array<i64: 1, 128>}, {transform_indices = @transform_3, window_bounds = array<i64: 16, 128>}]} {
    %c0_i32 = arith.constant 0 : i32
    %0 = arith.cmpi eq, %arg2, %c0_i32 : i32
    %1 = arith.extui %0 : i1 to i32
    %c0_i32_0 = arith.constant 0 : i32
    %2 = arith.cmpi ne, %1, %c0_i32_0 : i32
    scf.if %2 {
      %cst_10 = arith.constant 0.000000e+00 : f32
      %12 = vector.broadcast %cst_10 : f32 to vector<16x128xf32>
      %c0_11 = arith.constant 0 : index
      %c0_12 = arith.constant 0 : index
      %13 = vector.load %arg7[%c0_11, %c0_12] : memref<16x128xf32, #tpu.memory_space<vmem>>, vector<16x128xf32>
      tpu.vector_store %arg7[%c0_11, %c0_12], %12 {strides = array<i32>} : memref<16x128xf32, #tpu.memory_space<vmem>>, vector<16x128xf32>,
    } else {
    }
    %c0 = arith.constant 0 : index
    %c0_1 = arith.constant 0 : index
    %3 = vector.load %arg7[%c0, %c0_1] : memref<16x128xf32, #tpu.memory_space<vmem>>, vector<16x128xf32>
    %c0_2 = arith.constant 0 : index
    %c0_3 = arith.constant 0 : index
    %4 = vector.load %arg3[%c0_2, %c0_3] : memref<16x128xbf16, #tpu.memory_space<vmem>>, vector<16x128xbf16>
    %c0_4 = arith.constant 0 : index
    %c0_5 = arith.constant 0 : index
    %5 = vector.load %arg4[%c0_4, %c0_5] : memref<128x128xbf16, #tpu.memory_space<vmem>>, vector<128x128xbf16>
    %cst = arith.constant dense<0.000000e+00> : vector<16x128xf32>
    %6 = tpu.matmul %4, %5, %cst {dimension_numbers = #tpu.dot_dimension_numbers<[1], [1], [0], [0], [0, 0, 1, 0], [], []>} : vector<16x128xbf16>, vector<128x128xbf16>, vector<16x128xf32> -> vector<16x128xf32>
    %7 = arith.addf %3, %6 : vector<16x128xf32>
    %c0_6 = arith.constant 0 : index
    %c0_7 = arith.constant 0 : index
    %8 = vector.load %arg7[%c0_6, %c0_7] : memref<16x128xf32, #tpu.memory_space<vmem>>, vector<16x128xf32>
    tpu.vector_store %arg7[%c0_6, %c0_7], %7 {strides = array<i32>} : memref<16x128xf32, #tpu.memory_space<vmem>>, vector<16x128xf32>,
    %c0_i32_8 = arith.constant 0 : i32
    %9 = arith.cmpi eq, %arg2, %c0_i32_8 : i32
    %10 = arith.extui %9 : i1 to i32
    %c0_i32_9 = arith.constant 0 : i32
    %11 = arith.cmpi ne, %10, %c0_i32_9 : i32
    scf.if %11 {
      %c0_10 = arith.constant 0 : index
      %c0_11 = arith.constant 0 : index
      %12 = vector.load %arg7[%c0_10, %c0_11] : memref<16x128xf32, #tpu.memory_space<vmem>>, vector<16x128xf32>
      %c0_12 = arith.constant 0 : index
      %c0_13 = arith.constant 0 : index
      %13 = vector.load %arg5[%c0_12, %c0_13] : memref<1x128xf32, #tpu.memory_space<vmem>>, vector<1x128xf32>
      %14 = vector.broadcast %13 : vector<1x128xf32> to vector<16x128xf32>
      %15 = arith.addf %12, %14 : vector<16x128xf32>
      %c0_14 = arith.constant 0 : index
      %c0_15 = arith.constant 0 : index
      %16 = vector.load %arg6[%c0_14, %c0_15] : memref<16x128xf32, #tpu.memory_space<vmem>>, vector<16x128xf32>
      tpu.vector_store %arg6[%c0_14, %c0_15], %15 {strides = array<i32>} : memref<16x128xf32, #tpu.memory_space<vmem>>, vector<16x128xf32>,
    } else {
    }
    return
  }
  func.func @transform_0(%arg0: i32, %arg1: i32, %arg2: i32) -> (i32, i32) {
    %c0_i32 = arith.constant 0 : i32
    return %arg0, %arg2 : i32, i32
  }
  func.func @transform_1(%arg0: i32, %arg1: i32, %arg2: i32) -> (i32, i32) {
    %c0_i32 = arith.constant 0 : i32
    return %arg1, %arg2 : i32, i32
  }
  func.func @transform_2(%arg0: i32, %arg1: i32, %arg2: i32) -> (i32, i32) {
    %c0_i32 = arith.constant 0 : i32
    %c0_i32_0 = arith.constant 0 : i32
    return %c0_i32, %arg1 : i32, i32
  }
  func.func @transform_3(%arg0: i32, %arg1: i32, %arg2: i32) -> (i32, i32) {
    %c0_i32 = arith.constant 0 : i32
    return %arg0, %arg1 : i32, i32
  }
}

</mosaic_0001>

<bundles_post_ra>
// kernel: linear_forward.1
= control target key start
LH: loop header
LB: loop body
LE: loop exit
PB: predicated region body
PF: predicated region fallthrough
CT: control target
= control target key end

     0   :  { %v210_v0 = vmov 0.0   ;;  %vm211_vm0 = vmmov 0   ;;  %s268_s1 = inlined_call_operand.vmem [shape: bf16[128,128], index: 1, kind: input, shape index: {}]   ;;  %s269_s0 = inlined_call_operand.vmem [shape: bf16[16,128], index: 0, kind: input, shape index: {}]   ;;  %s270_s2 = inlined_call_operand.vmem [shape: f32[1,128], index: 2, kind: input, shape index: {}]   ;;  %s271_s3 = inlined_call_operand.vmem [shape: f32[16,128], index: 3, kind: output, shape index: {}]  }
   0x1   :  { %179 = vmatprep.subr.bf16.mxu0 %v210_v0  ;;  %v201_v1 = vld [vmem:[%s268_s1] sm:$0xff]   ;;  %195 = vmatprep.mubr.msk.bf16.mxu0 %vm211_vm0, %v210_v0  ;;  %v202_v2 = vld [vmem:[%s268_s1 + $0x8] sm:$0xff]   ;;  %v203_v3 = vld [vmem:[%s268_s1 + $0x10] sm:$0xff]  }
   0x2   :  { %180 = vmatpush3.bf16.xpose.msra.mxu0 %v201_v1  ;;  %v204_v4 = vld [vmem:[%s268_s1 + $0x18] sm:$0xff]   ;;  %v205_v5 = vld [vmem:[%s268_s1 + $0x20] sm:$0xff]   ;;  %v206_v6 = vld [vmem:[%s268_s1 + $0x28] sm:$0xff]  }
   0x3   :  { %181 = vmatprep.subr.bf16.mxu0 %v210_v0  ;;  %v207_v7 = vld [vmem:[%s268_s1 + $0x30] sm:$0xff]   ;;  %v208_v8 = vld [vmem:[%s268_s1 + $0x38] sm:$0xff]   ;;  %v209_v9 = vld [vmem:[%s269_s0] sm:$0xff]  }
   0x4   :  { %v169_v10 = vld [vmem:[%s270_s2] ss:$0 sm:$0xff] }
   0xa   :  { %182 = vmatpush3.bf16.xpose.msra.mxu0 %v202_v2 }
   0xb   :  { %183 = vmatprep.subr.bf16.mxu0 %v210_v0 }
  0x12   :  { %184 = vmatpush3.bf16.xpose.msra.mxu0 %v203_v3 }
  0x13   :  { %185 = vmatprep.subr.bf16.mxu0 %v210_v0 }
  0x1a   :  { %186 = vmatpush3.bf16.xpose.msra.mxu0 %v204_v4 }
  0x1b   :  { %187 = vmatprep.subr.bf16.mxu0 %v210_v0 }
  0x22   :  { %188 = vmatpush3.bf16.xpose.msra.mxu0 %v205_v5 }
  0x23   :  { %189 = vmatprep.subr.bf16.mxu0 %v210_v0 }
  0x2a   :  { %190 = vmatpush3.bf16.xpose.msra.mxu0 %v206_v6 }
  0x2b   :  { %191 = vmatprep.subr.bf16.mxu0 %v210_v0 }
  0x32   :  { %192 = vmatpush3.bf16.xpose.msra.mxu0 %v207_v7 }
  0x33   :  { %193 = vmatprep.subr.bf16.mxu0 %v210_v0 }
  0x3a   :  { %194 = vmatpush3.bf16.xpose.msra.mxu0 %v208_v8 }
  0x41   :  { %196 = vmatmul.mubr.bf16.vlgmr.msra.gmra.mrb[0].mxu0 %v209_v9 }
 0x114   :  { %v129_v11 = vpop.f32.mrb[0].mxu0 }
 0x115   :  { %v152_v12 = vadd.f32 %v169_v10, %v129_v11  ;;  %v197_v13 = vpop.f32.mrb[1].mxu0 }
 0x116   :  { %v132_v14 = vpop.f32.mrb[2].mxu0 }
 0x117   :  { %154 = vst [vmem:[%s271_s3] sm:$0xff] %v152_v12  ;;  %v153_v15 = vadd.f32 %v169_v10, %v132_v14  ;;  %v198_v16 = vpop.f32.mrb[3].mxu0 }
 0x119   :  { %155 = vst [vmem:[%s271_s3 + $0x8] sm:$0xff] %v153_v15 }

</bundles_post_ra>
